<compile_context>
chip_gen: v7x
topology: tpu7x:2x2x1
jax: 0.10.0
libtpu: 0.0.40
codegen_flags: <defaults>
</compile_context>

<pallas_src>
import functools
import math

import jax
import jax.numpy as jnp
from jax.experimental import pallas as pl
from jax.experimental.pallas import tpu as pltpu

_LANES = 128
_STAT_ROWS = 8        # 4 real stats + 4 zero rows -> full-sublane, unmasked stores
_PAD_LOGIT = -1e9     # sigmoid(pad)->0 and bce(pad, 0)->0: masked/padded elems contribute 0


def _round_up(a, b):
    return ((a + b - 1) // b) * b


def _bce_dice_kernel(x_ref, t_ref, stat_ref, *, kk, rows, rows_tile, ragged, single_chunk):
    """One grid step = (sample tile, row partition, row chunk).

    x_ref / t_ref : (B_tile, rows_tile, 128) blocks in their original dtypes.
    stat_ref      : (B_tile, 8, 128) resident accumulator; rows 0..3 hold lane-wise
                    partial sums of [bce, p*t, p, t] per sample, rows 4..7 are zero pad.
    """
    x = x_ref[...].astype(jnp.float32)
    t = t_ref[...].astype(jnp.float32)

    if ragged:
        # Tail chunk reads past the true `rows`; force all four contributions to 0.
        p_id = pl.program_id(1)
        k_id = pl.program_id(2)
        row_start = (p_id * kk + k_id) * rows_tile
        row_ids = jax.lax.broadcasted_iota(jnp.int32, (1, rows_tile, 1), 1)
        valid = row_ids < (rows - row_start)
        x = jnp.where(valid, x, _PAD_LOGIT)
        t = jnp.where(valid, t, 0.0)

    # Share one tanh between sigmoid and the stable BCE log term (no divides, no exp):
    #   sigmoid(x)       = 0.5 + 0.5 * tanh(x/2)
    #   log1p(exp(-|x|)) = -log(sigmoid(|x|)) = -log(0.5 + 0.5*|tanh(x/2)|)
    th = jnp.tanh(0.5 * x)
    p = 0.5 + 0.5 * th
    bce_el = jnp.maximum(x, 0.0) - x * t - jnp.log(0.5 + 0.5 * jnp.abs(th))

    # Lane-wise partial sums over the row (sublane) axis; the cross-lane reduce and the
    # scalar combination are done in the tiny JAX epilogue.
    stat4 = jnp.concatenate(
        [
            jnp.sum(bce_el, axis=1, keepdims=True),
            jnp.sum(p * t, axis=1, keepdims=True),
            jnp.sum(p, axis=1, keepdims=True),
            jnp.sum(t, axis=1, keepdims=True),
        ],
        axis=1,
    )                                                                  # (B_tile, 4, 128)
    partial = jnp.concatenate([stat4, jnp.zeros_like(stat4)], axis=1)  # (B_tile, 8, 128)

    if single_chunk:
        stat_ref[...] = partial
    else:
        k_id = pl.program_id(2)

        @pl.when(k_id == 0)
        def _():
            stat_ref[...] = partial

        @pl.when(k_id > 0)
        def _():
            stat_ref[...] = stat_ref[...] + partial


def bce_dice_loss(logits, target, *, max_rows_per_step=4096):
    """logits: (N, 1, H, W) float; target: (N, H, W) 0/1 mask. Returns scalar f32.

    Inputs are streamed in their incoming dtypes (no wrapper-side casts).
    """
    N = logits.shape[0]
    L = math.prod(logits.shape[1:])
    assert target.size // N == L, "target/logits element counts per sample differ"
    total_elems = N * L  # BCE mean divisor over the *unpadded* elements

    x = logits.reshape(N, L)
    t = target.reshape(N, L)

    # Lane-dense layout (N, rows, 128).
    if L % _LANES != 0:
        # TODO(synk): lane-ragged images pay one materialized pad copy; fold into in-kernel
        # lane masking if this path ever matters (H*W is lane-aligned for the spec's sizes).
        pad = _round_up(L, _LANES) - L
        x = jnp.pad(x, ((0, 0), (0, pad)), constant_values=_PAD_LOGIT)
        t = jnp.pad(t, ((0, 0), (0, pad)), constant_values=0)
    rows = x.shape[1] // _LANES
    x = x.reshape(N, rows, _LANES)
    t = t.reshape(N, rows, _LANES)

    # Sublane multiple required by the narrower input dtype (f32->8, bf16->16, int8/bool->32).
    sub = max(32 // min(x.dtype.itemsize, 4), 32 // min(t.dtype.itemsize, 4))

    if rows <= max_rows_per_step:
        # Small image: whole sample per block; pack several samples per grid step to
        # amortize the per-step fixed cost. b_tile divides N exactly (no ragged batch).
        rows_tile, num_chunks, ragged = rows, 1, False
        cap = max(1, max_rows_per_step // max(rows, 1))
        b_tile = 1
        for d in range(1, min(N, cap) + 1):
            if N % d == 0:
                b_tile = d
        P, kk = 1, 1
    else:
        # Large image: chunk the row axis; NO jnp.pad copy — the ragged tail (at most
        # rows_tile-1 rows) is masked in-kernel. rows_tile stays sublane-aligned.
        b_tile = 1
        num_chunks = pl.cdiv(rows, max_rows_per_step)
        rows_tile = _round_up(pl.cdiv(rows, num_chunks), sub)
        num_chunks = pl.cdiv(rows, rows_tile)
        ragged = (rows % rows_tile) != 0
        # v7x: when the batch axis alone cannot feed both TensorCores, split the row axis
        # across a second "parallel" grid axis with separate partial accumulators.
        P = 2 if (N % 2 == 1 and num_chunks % 2 == 0) else 1
        kk = num_chunks // P

    single_chunk = kk == 1

    in_spec_x = pl.BlockSpec((b_tile, rows_tile, _LANES), lambda b, p, k: (b, p * kk + k, 0))
    in_spec_t = pl.BlockSpec((b_tile, rows_tile, _LANES), lambda b, p, k: (b, p * kk + k, 0))
    out_spec = pl.BlockSpec((b_tile, _STAT_ROWS, _LANES), lambda b, p, k: (b, p, 0))

    elems = N * rows * _LANES
    cost = pl.CostEstimate(
        flops=12 * elems,
        transcendentals=2 * elems,
        bytes_accessed=(x.size * x.dtype.itemsize + t.size * t.dtype.itemsize
                        + N * P * _STAT_ROWS * _LANES * 4),
    )

    kernel = functools.partial(
        _bce_dice_kernel,
        kk=kk, rows=rows, rows_tile=rows_tile, ragged=ragged, single_chunk=single_chunk,
    )

    stats = pl.pallas_call(
        kernel,
        out_shape=jax.ShapeDtypeStruct((N, P * _STAT_ROWS, _LANES), jnp.float32),
        grid_spec=pltpu.PrefetchScalarGridSpec(
            num_scalar_prefetch=0,
            grid=(N // b_tile, P, kk),
            in_specs=[in_spec_x, in_spec_t],
            out_specs=out_spec,
        ),
        compiler_params=pltpu.CompilerParams(
            dimension_semantics=("parallel", "parallel", "arbitrary"),
        ),
        cost_estimate=cost,
    )(x, t)

    # Tiny epilogue: fold row-partitions + lanes, then the scalar combination.
    stats = stats.reshape(N, P, _STAT_ROWS, _LANES)[:, :, :4, :].sum(axis=(1, 3))  # (N, 4)
    bce_sum, inter, psum, tsum = stats[:, 0], stats[:, 1], stats[:, 2], stats[:, 3]

    smooth = 1e-5
    bce = jnp.sum(bce_sum) / total_elems
    dice_per_sample = (2.0 * inter + smooth) / (psum + tsum + smooth)
    dice = 1.0 - jnp.sum(dice_per_sample) / N
    return 0.5 * bce + dice


def _reference(logits, target):
    N = logits.shape[0]
    x = logits.reshape(N, -1).astype(jnp.float32)
    t = target.reshape(N, -1).astype(jnp.float32)
    bce_el = jnp.maximum(x, 0.0) - x * t + jnp.log1p(jnp.exp(-jnp.abs(x)))
    bce = jnp.mean(bce_el)
    p = jax.nn.sigmoid(x)
    smooth = 1e-5
    inter = jnp.sum(p * t, axis=1)
    dice = (2.0 * inter + smooth) / (jnp.sum(p, axis=1) + jnp.sum(t, axis=1) + smooth)
    dice = 1.0 - jnp.sum(dice) / N
    return 0.5 * bce + dice


if __name__ == "__main__":
    key = jax.random.PRNGKey(0)
    k1, k2 = jax.random.split(key)

    # TODO(synk): only the default 'BCEDiceLoss' branch is implemented (OHEM variants
    # reference external classes not present in the spec).
    N, C, H, W = 2, 1, 16, 16  # NUM_CLASSES = 1, BATCH_SIZE = 2 in the original script
    logits = jax.random.normal(k1, (N, C, H, W), dtype=jnp.float32)
    target = (jax.random.uniform(k2, (N, H, W)) > 0.5).astype(jnp.float32)

    loss = jax.block_until_ready(bce_dice_loss(logits, target))
    ref = jax.block_until_ready(_reference(logits, target))

    assert jnp.allclose(loss, ref, rtol=1e-5, atol=1e-5), (loss, ref)
    print("KERNEL_OK")
</pallas_src>

<mosaic_0001>
module attributes {stable_mosaic.version = 11 : i64} {
  func.func @_bce_dice_kernel(%arg0: i32, %arg1: i32, %arg2: i32, %arg3: memref<2x2x128xf32, #tpu.memory_space<vmem>>, %arg4: memref<2x2x128xf32, #tpu.memory_space<vmem>>, %arg5: memref<2x8x128xf32, #tpu.memory_space<vmem>>) attributes {dimension_semantics = [#tpu.dimension_semantics<parallel>, #tpu.dimension_semantics<parallel>, #tpu.dimension_semantics<arbitrary>], iteration_bounds = array<i64: 1, 1, 1>, scalar_prefetch = 0 : i64, scratch_operands = 0 : i64, tpu.core_type = #tpu.core_type<tc>, window_params = [{transform_indices = @transform_0, window_bounds = array<i64: 2, 2, 128>}, {transform_indices = @transform_1, window_bounds = array<i64: 2, 2, 128>}, {transform_indices = @transform_2, window_bounds = array<i64: 2, 8, 128>}]} {
    %c0 = arith.constant 0 : index
    %c0_0 = arith.constant 0 : index
    %c0_1 = arith.constant 0 : index
    %0 = vector.load %arg3[%c0, %c0_0, %c0_1] : memref<2x2x128xf32, #tpu.memory_space<vmem>>, vector<2x2x128xf32>
    %c0_2 = arith.constant 0 : index
    %c0_3 = arith.constant 0 : index
    %c0_4 = arith.constant 0 : index
    %1 = vector.load %arg4[%c0_2, %c0_3, %c0_4] : memref<2x2x128xf32, #tpu.memory_space<vmem>>, vector<2x2x128xf32>
    %cst = arith.constant 5.000000e-01 : f32
    %2 = vector.broadcast %cst : f32 to vector<2x2x128xf32>
    %3 = arith.mulf %2, %0 : vector<2x2x128xf32>
    %4 = math.tanh %3 : vector<2x2x128xf32>
    %cst_5 = arith.constant 5.000000e-01 : f32
    %5 = vector.broadcast %cst_5 : f32 to vector<2x2x128xf32>
    %6 = arith.mulf %5, %4 : vector<2x2x128xf32>
    %cst_6 = arith.constant 5.000000e-01 : f32
    %7 = vector.broadcast %cst_6 : f32 to vector<2x2x128xf32>
    %8 = arith.addf %7, %6 : vector<2x2x128xf32>
    %cst_7 = arith.constant 0.000000e+00 : f32
    %9 = vector.broadcast %cst_7 : f32 to vector<2x2x128xf32>
    %10 = arith.maximumf %0, %9 : vector<2x2x128xf32>
    %11 = arith.mulf %0, %1 : vector<2x2x128xf32>
    %12 = arith.subf %10, %11 : vector<2x2x128xf32>
    %13 = math.absf %4 : vector<2x2x128xf32>
    %cst_8 = arith.constant 5.000000e-01 : f32
    %14 = vector.broadcast %cst_8 : f32 to vector<2x2x128xf32>
    %15 = arith.mulf %14, %13 : vector<2x2x128xf32>
    %cst_9 = arith.constant 5.000000e-01 : f32
    %16 = vector.broadcast %cst_9 : f32 to vector<2x2x128xf32>
    %17 = arith.addf %16, %15 : vector<2x2x128xf32>
    %18 = math.log %17 : vector<2x2x128xf32>
    %19 = arith.subf %12, %18 : vector<2x2x128xf32>
    %cst_10 = arith.constant dense<0.000000e+00> : vector<2x128xf32>
    %20 = vector.multi_reduction <add>, %19, %cst_10 [1] : vector<2x2x128xf32> to vector<2x128xf32>
    %21 = vector.shape_cast %20 : vector<2x128xf32> to vector<2x1x128xf32>
    %22 = arith.mulf %8, %1 : vector<2x2x128xf32>
    %cst_11 = arith.constant dense<0.000000e+00> : vector<2x128xf32>
    %23 = vector.multi_reduction <add>, %22, %cst_11 [1] : vector<2x2x128xf32> to vector<2x128xf32>
    %24 = vector.shape_cast %23 : vector<2x128xf32> to vector<2x1x128xf32>
    %cst_12 = arith.constant dense<0.000000e+00> : vector<2x128xf32>
    %25 = vector.multi_reduction <add>, %8, %cst_12 [1] : vector<2x2x128xf32> to vector<2x128xf32>
    %26 = vector.shape_cast %25 : vector<2x128xf32> to vector<2x1x128xf32>
    %cst_13 = arith.constant dense<0.000000e+00> : vector<2x128xf32>
    %27 = vector.multi_reduction <add>, %1, %cst_13 [1] : vector<2x2x128xf32> to vector<2x128xf32>
    %28 = vector.shape_cast %27 : vector<2x128xf32> to vector<2x1x128xf32>
    %29 = tpu.concatenate %21, %24, %26, %28 in 1 : vector<2x1x128xf32>, vector<2x1x128xf32>, vector<2x1x128xf32>, vector<2x1x128xf32> -> vector<2x4x128xf32>
    %cst_14 = arith.constant 0.000000e+00 : f32
    %30 = vector.broadcast %cst_14 : f32 to vector<2x4x128xf32>
    %31 = tpu.concatenate %29, %30 in 1 : vector<2x4x128xf32>, vector<2x4x128xf32> -> vector<2x8x128xf32>
    %c0_15 = arith.constant 0 : index
    %c0_16 = arith.constant 0 : index
    %c0_17 = arith.constant 0 : index
    %32 = vector.load %arg5[%c0_15, %c0_16, %c0_17] : memref<2x8x128xf32, #tpu.memory_space<vmem>>, vector<2x8x128xf32>
    tpu.vector_store %arg5[%c0_15, %c0_16, %c0_17], %31 {strides = array<i32>} : memref<2x8x128xf32, #tpu.memory_space<vmem>>, vector<2x8x128xf32>,
    return
  }
  func.func @transform_0(%arg0: i32, %arg1: i32, %arg2: i32) -> (i32, i32, i32) {
    %c1_i32 = arith.constant 1 : i32
    %0 = arith.muli %arg1, %c1_i32 : i32
    %1 = arith.addi %0, %arg2 : i32
    %c0_i32 = arith.constant 0 : i32
    %c0_i32_0 = arith.constant 0 : i32
    return %arg0, %1, %c0_i32 : i32, i32, i32
  }
  func.func @transform_1(%arg0: i32, %arg1: i32, %arg2: i32) -> (i32, i32, i32) {
    %c1_i32 = arith.constant 1 : i32
    %0 = arith.muli %arg1, %c1_i32 : i32
    %1 = arith.addi %0, %arg2 : i32
    %c0_i32 = arith.constant 0 : i32
    %c0_i32_0 = arith.constant 0 : i32
    return %arg0, %1, %c0_i32 : i32, i32, i32
  }
  func.func @transform_2(%arg0: i32, %arg1: i32, %arg2: i32) -> (i32, i32, i32) {
    %c0_i32 = arith.constant 0 : i32
    %c0_i32_0 = arith.constant 0 : i32
    return %arg0, %arg1, %c0_i32 : i32, i32, i32
  }
}

</mosaic_0001>

<bundles_post_ra>
// kernel: tpu_custom_call.1
= control target key start
LH: loop header
LB: loop body
LE: loop exit
PB: predicated region body
PF: predicated region fallthrough
CT: control target
= control target key end

     0   :  { %7 = vsyncpa [#allocation3], 0  ;;  %s323_s0 = inlined_call_operand.hbm [shape: f32[2,2,128], index: 0, kind: input, shape index: {}]   ;;  %s324_s1 = inlined_call_operand.hbm [shape: f32[2,2,128], index: 1, kind: input, shape index: {}]   ;;  %s325_s2 = inlined_call_operand.hbm [shape: f32[2,8,128], index: 2, kind: output, shape index: {}]  }
   0x1   :  { %8 = vsyncpa [#allocation6], 0 }
   0x2   :  { %9 = vsyncpa [#allocation4], 0  ;;  %s255_s9 = smov [#allocation2]   ;;  %s183_s13 = scalar_lea.hbm %s323_s0, 64 }
   0x3   :  { %s18_s10 = sshll.u32 %s255_s9, 4  ;;  %p184_p0 = scmp.ne.s32.totalorder %s323_s0, %s183_s13  ;;  %s19_s10 = int_to_ptr.vmem [resolvable:$true] %s18_s10 }
   0x4   :  { %p187_p1 = scmp.lt.u32.totalorder %s183_s13, %s323_s0 }
   0x6   :  { %p189_p2 = pnand %p187_p1, %p184_p0 }
   0x8   :  { %192 = shalt.err (!%p189_p2)
}
   0x9   :  { %s193_s18 = scalar_lea.vmem %s19_s10, 64  ;;  %p198_p4 = scmp.lt.s32.totalorder %s19_s10, %s19_s10 }
   0xa   :  { %p194_p3 = scmp.ne.s32.totalorder %s19_s10, %s193_s18  ;;  %p199_p5 = scmp.lt.s32.totalorder %s193_s18, %s193_s18 }
   0xc   :  { %p200_p6 = por %p199_p5, %p198_p4 }
   0xe   :  { %p201_p7 = pnand %p200_p6, %p194_p3 }
  0x10   :  { %204 = shalt.err (!%p201_p7)
}
  0x11   :  { %s256_s19 = smov 32   ;;  %s257_s20 = smov 2  }
  0x12   :  { %24 = dma.hbm_to_vmem [thread:$0]  %s323_s0, 64, %s19_s10, [#allocation3], %s256_s19, %s256_s19, %s257_s20  }
  0x13   :  { %s258_s23 = smov [#allocation5]   ;;  %s205_s27 = scalar_lea.hbm %s324_s1, 64 }
  0x14   :  { %s33_s24 = sshll.u32 %s258_s23, 4  ;;  %p206_p8 = scmp.ne.s32.totalorder %s324_s1, %s205_s27  ;;  %s34_s24 = int_to_ptr.vmem [resolvable:$true] %s33_s24 }
  0x15   :  { %p209_p9 = scmp.lt.u32.totalorder %s205_s27, %s324_s1 }
  0x17   :  { %p211_p10 = pnand %p209_p9, %p206_p8 }
  0x19   :  { %214 = shalt.err (!%p211_p10)
}
  0x1a   :  { %s215_s4 = scalar_lea.vmem %s34_s24, 64  ;;  %p220_p12 = scmp.lt.s32.totalorder %s34_s24, %s34_s24 }
  0x1b   :  { %p216_p11 = scmp.ne.s32.totalorder %s34_s24, %s215_s4  ;;  %p221_p13 = scmp.lt.s32.totalorder %s215_s4, %s215_s4 }
  0x1d   :  { %p222_p0 = por %p221_p13, %p220_p12 }
  0x1f   :  { %p223_p1 = pnand %p222_p0, %p216_p11 }
  0x21   :  { %226 = shalt.err (!%p223_p1)
}
  0x22   :  { %39 = dma.hbm_to_vmem [thread:$0]  %s324_s1, 64, %s34_s24, [#allocation6], %s256_s19, %s256_s19, %s257_s20  }
  0x23   :  { %249 = dma.done.wait [#allocation3], 64  }
  0x24   :  { %250 = vsyncadd [#allocation3], 4294967232 }
  0x25   :  { %251 = dma.done.wait [#allocation6], 64  }
  0x26   :  { %252 = vsyncadd [#allocation6], 4294967232  ;;  %v48_v0 = vld [vmem:[#allocation2] sm:$0x3]  ;;  %v49_v1 = vld [vmem:[#allocation2 + $0x2] sm:$0x3] }
  0x27   :  { %v52_v2 = vmul.f32 0.5, %v48_v0  ;;  %v53_v3 = vmul.f32 0.5, %v49_v1  ;;  %v50_v12 = vld [vmem:[#allocation5] sm:$0x3]  ;;  %vm78_vm0 = vcmask 1041408   ;;  %v60_v27 = vmax.f32 %v48_v0, 0.0 }
  0x28   :  { %v51_v17 = vld [vmem:[#allocation5 + $0x2] sm:$0x3]  ;;  %v123_v23 = vsel %vm78_vm0, %v50_v12, 0.0  ;;  %v62_v28 = vmul.f32 %v50_v12, %v48_v0  ;;  %v61_v32 = vmax.f32 %v49_v1, 0.0  ;;  %vm137_vm1 = vcmask 1040384   ;;  %s259_s1 = smov [#allocation7]  }
  0x29   :  { %175 = vtanh.f32 %v52_v2  ;;  %v130_v26 = vsel %vm78_vm0, %v51_v17, 0.0  ;;  %v124_v31 = vrot.slane %v123_v23, 4  ;;  %v63_v33 = vmul.f32 %v51_v17, %v49_v1  ;;  %s155_s6 = sshll.u32 %s259_s1, 4  ;;  %s156_s6 = int_to_ptr.vmem [resolvable:$true] %s155_s6 }
  0x2a   :  { %177 = vtanh.f32 %v53_v3  ;;  %v131_v35 = vrot.slane %v130_v26, 4  ;;  %v64_v37 = vsub.f32 %v60_v27, %v62_v28  ;;  %vm142_vm2 = vcmask 1042432   ;;  %s227_s7 = scalar_lea.vmem %s156_s6, 256  ;;  %p232_p3 = scmp.lt.s32.totalorder %s156_s6, %s156_s6 }
  0x2b   :  { %v125_v41 = vadd.f32 %v124_v31, %v123_v23  ;;  %v65_v42 = vsub.f32 %v61_v32, %v63_v33  ;;  %vm145_vm3 = vcmask 1043456   ;;  %p228_p2 = scmp.ne.s32.totalorder %s156_s6, %s227_s7  ;;  %p233_p4 = scmp.lt.s32.totalorder %s227_s7, %s227_s7 }
  0x2c   :  { %v132_v46 = vadd.f32 %v131_v35, %v130_v26 }
  0x2d   :  { %v126_v52 = vrot.slane %v125_v41, 2  ;;  %p234_p5 = por %p233_p4, %p232_p3 }
  0x2e   :  { %v133_v56 = vrot.slane %v132_v46, 2 }
  0x2f   :  { %v127_v0 = vadd.f32 %v126_v52, %v125_v41  ;;  %p235_p6 = pnand %p234_p5, %p228_p2 }
  0x30   :  { %v134_v3 = vadd.f32 %v133_v56, %v132_v46 }
  0x33   :  { %v176_v4 = vpop.eup %175 }
  0x34   :  { %v178_v5 = vpop.eup %177  ;;  %v56_v6 = vmul.f32 0.5, %v176_v4  ;;  %v66_v7 = vand.u32 2147483647, %v176_v4 }
  0x35   :  { %v57_v8 = vmul.f32 0.5, %v178_v5  ;;  %v67_v9 = vand.u32 2147483647, %v178_v5 }
  0x36   :  { %v58_v10 = vadd.f32 0.5, %v56_v6  ;;  %v68_v11 = vmul.f32 0.5, %v66_v7 }
  0x37   :  { %v59_v13 = vadd.f32 0.5, %v57_v8  ;;  %v69_v14 = vmul.f32 0.5, %v67_v9 }
  0x38   :  { %v70_v15 = vadd.f32 0.5, %v68_v11  ;;  %v93_v16 = vmul.f32 %v58_v10, %v50_v12  ;;  %v109_v21 = vsel %vm78_vm0, %v58_v10, 0.0  ;;  %v128_v10 = vrot.slane %v127_v0, 1 }
  0x39   :  { %v71_v18 = vadd.f32 0.5, %v69_v14  ;;  %v94_v19 = vmul.f32 %v59_v13, %v51_v17  ;;  %v116_v24 = vsel %vm78_vm0, %v59_v13, 0.0  ;;  %v110_v29 = vrot.slane %v109_v21, 4 }
  0x3a   :  { %179 = vlog2.f32 %v70_v15  ;;  %v95_v20 = vsel %vm78_vm0, %v93_v16, 0.0  ;;  %v117_v34 = vrot.slane %v116_v24, 4  ;;  %v135_v13 = vrot.slane %v134_v3, 1 }
  0x3b   :  { %181 = vlog2.f32 %v71_v18  ;;  %v102_v22 = vsel %vm78_vm0, %v94_v19, 0.0  ;;  %v96_v25 = vrot.slane %v95_v20, 4  ;;  %v111_v38 = vadd.f32 %v110_v29, %v109_v21 }
  0x3c   :  { %v103_v30 = vrot.slane %v102_v22, 4  ;;  %v118_v43 = vadd.f32 %v117_v34, %v116_v24  ;;  %v136_v23 = vadd.f32 %v135_v13, %v134_v3 }
  0x3d   :  { %v97_v36 = vadd.f32 %v96_v25, %v95_v20  ;;  %v112_v50 = vrot.slane %v111_v38, 2  ;;  %v129_v20 = vadd.f32 %v128_v10, %v127_v0 }
  0x3e   :  { %v104_v39 = vadd.f32 %v103_v30, %v102_v22  ;;  %v119_v54 = vrot.slane %v118_v43, 2 }
  0x3f   :  { %v98_v47 = vrot.slane %v97_v36, 2  ;;  %v113_v60 = vadd.f32 %v112_v50, %v111_v38 }
  0x40   :  { %v105_v51 = vrot.slane %v104_v39, 2  ;;  %v120_v1 = vadd.f32 %v119_v54, %v118_v43 }
  0x41   :  { %v99_v58 = vadd.f32 %v98_v47, %v97_v36  ;;  %v114_v6 = vrot.slane %v113_v60, 1 }
  0x42   :  { %v106_v62 = vadd.f32 %v105_v51, %v104_v39  ;;  %v121_v11 = vrot.slane %v120_v1, 1 }
  0x43   :  { %v100_v5 = vrot.slane %v99_v58, 1  ;;  %v115_v16 = vadd.f32 %v114_v6, %v113_v60 }
  0x44   :  { %v180_v40 = vpop.eup %179  ;;  %v107_v8 = vrot.slane %v106_v62, 1  ;;  %v122_v21 = vadd.f32 %v121_v11, %v120_v1 }
  0x45   :  { %v182_v44 = vpop.eup %181  ;;  %v73_v45 = vmul.f32 0.6931472, %v180_v40  ;;  %v101_v15 = vadd.f32 %v100_v5, %v99_v58 }
  0x46   :  { %v75_v48 = vmul.f32 0.6931472, %v182_v44  ;;  %v108_v18 = vadd.f32 %v107_v8, %v106_v62 }
  0x47   :  { %v76_v49 = vsub.f32 %v64_v37, %v73_v45 }
  0x48   :  { %v77_v53 = vsub.f32 %v65_v42, %v75_v48 }
  0x49   :  { %v79_v55 = vsel %vm78_vm0, %v76_v49, 0.0 }
  0x4a   :  { %v80_v57 = vrot.slane %v79_v55, 4  ;;  %v86_v59 = vsel %vm78_vm0, %v77_v53, 0.0 }
  0x4b   :  { %v87_v61 = vrot.slane %v86_v59, 4 }
  0x4c   :  { %v81_v63 = vadd.f32 %v80_v57, %v79_v55 }
  0x4d   :  { %v88_v2 = vadd.f32 %v87_v61, %v86_v59 }
  0x4e   :  { %v82_v4 = vrot.slane %v81_v63, 2 }
  0x4f   :  { %v89_v7 = vrot.slane %v88_v2, 2 }
  0x50   :  { %v83_v9 = vadd.f32 %v82_v4, %v81_v63 }
  0x51   :  { %v90_v12 = vadd.f32 %v89_v7, %v88_v2 }
  0x52   :  { %v84_v14 = vrot.slane %v83_v9, 1 }
  0x53   :  { %v91_v17 = vrot.slane %v90_v12, 1 }
  0x54   :  { %v85_v19 = vadd.f32 %v84_v14, %v83_v9 }
  0x55   :  { %v92_v22 = vadd.f32 %v91_v17, %v90_v12 }
  0x56   :  { %v138_v24 = vsel %vm137_vm1, %v85_v19, %v101_v15 }
  0x57   :  { %v140_v25 = vsel %vm78_vm0, %v138_v24, %v115_v16  ;;  %v139_v26 = vsel %vm137_vm1, %v92_v22, %v108_v18 }
  0x58   :  { %v143_v27 = vsel %vm142_vm2, %v140_v25, %v129_v20  ;;  %v141_v28 = vsel %vm78_vm0, %v139_v26, %v122_v21 }
  0x59   :  { %v146_v29 = vsel %vm145_vm3, %v143_v27, 0.0  ;;  %v144_v30 = vsel %vm142_vm2, %v141_v28, %v136_v23 }
  0x5a   :  { %148 = vst [vmem:[#allocation7] sm:$0xff] %v146_v29  ;;  %v147_v31 = vsel %vm145_vm3, %v144_v30, 0.0 }
  0x5b   :  { %149 = vst [vmem:[#allocation7 + $0x8] sm:$0xff] %v147_v31 }
  0x5c   :  { %238 = shalt.err (!%p235_p6)
}
  0x5d   :  { %s239_s10 = scalar_lea.hbm %s325_s2, 256 }
  0x5e   :  { %p240_p7 = scmp.ne.s32.totalorder %s325_s2, %s239_s10  ;;  %p243_p8 = scmp.lt.u32.totalorder %s239_s10, %s325_s2 }
  0x60   :  { %p245_p9 = pnand %p243_p8, %p240_p7 }
  0x62   :  { %248 = shalt.err (!%p245_p9)
}
  0x63   :  { %s260_s15 = smov 128   ;;  %s261_s16 = smov 8  }
  0x64   :  { %161 = dma.vmem_to_hbm [thread:$0]  %s156_s6, 256, %s325_s2, [#allocation4], %s260_s15, %s260_s15, %s261_s16  }
  0x65   :  { %253 = dma.done.wait [#allocation4], 256  }
  0x66   :  { %254 = vsyncadd [#allocation4], 4294967040 }
  0x67   :  { %165 = vsyncpa [#allocation3], 1 }
  0x68   :  { %166 = vsyncpa [#allocation6], 1 }
  0x69   :  { %167 = vsyncpa [#allocation4], 1 }

</bundles_post_ra>
